<compile_context>
chip_gen: v7x
topology: tpu7x:2x2x1
jax: 0.10.0
libtpu: 0.0.40
codegen_flags: <defaults>
</compile_context>

<pallas_src>
import numpy as np
import jax
import jax.numpy as jnp
from jax.experimental import pallas as pl
from jax.experimental.pallas import tpu as pltpu


def _round_up(a, m):
    return ((a + m - 1) // m) * m


def _cdiv(a, b):
    return -(-a // b)


# ----------------------------- Pallas kernel -----------------------------

def _sc_kernel(xf_ref, yf_ref, dft_ref, num_ref, den_ref):
    """One grid step: windowed DFT of a tile of x-frames and of y-frames (two
    bf16 MXU matmuls against the shared [win*cos | -win*sin] RHS), 4th-root-of-
    power magnitude via two EUP rsqrt pushes, and elementwise accumulation of
    |y_mag - x_mag| and y_mag into lane-dense resident f32 output blocks."""
    i = pl.program_id(1)

    @pl.when(i == 0)
    def _():
        num_ref[...] = jnp.zeros_like(num_ref)
        den_ref[...] = jnp.zeros_like(den_ref)

    dft = dft_ref[...]                                    # (n_fft, 2*nbh) bf16
    xr = jnp.dot(xf_ref[...], dft, preferred_element_type=jnp.float32)
    yr = jnp.dot(yf_ref[...], dft, preferred_element_type=jnp.float32)

    nbh = xr.shape[1] // 2

    def mag(r):
        re = r[:, :nbh]                                   # lane-aligned halves
        im = r[:, nbh:]
        p = re * re + im * im
        # sqrt(max(sqrt(p), 1e-7)) == max(p, 1e-14)**0.25 : two bare EUP rsqrt
        # pushes instead of two jnp.sqrt (each rsqrt+mul+fixup).
        return jax.lax.rsqrt(jax.lax.rsqrt(jnp.maximum(p, 1e-14)))

    x_mag = mag(xr)
    y_mag = mag(yr)

    # Elementwise VPU accumulation into resident output blocks; no XLU reduce
    # and no SMEM read-modify-write per grid step.
    num_ref[...] += jnp.abs(y_mag - x_mag)
    den_ref[...] += y_mag


def _sc_pallas(xf, yf, dft, tm, steps, n_splits, nbh):
    n_fft = xf.shape[-1]
    return pl.pallas_call(
        _sc_kernel,
        out_shape=(jax.ShapeDtypeStruct((n_splits, tm, nbh), jnp.float32),
                   jax.ShapeDtypeStruct((n_splits, tm, nbh), jnp.float32)),
        grid_spec=pltpu.PrefetchScalarGridSpec(
            num_scalar_prefetch=0,
            grid=(n_splits, steps),
            in_specs=[
                pl.BlockSpec((tm, n_fft), lambda c, i: (c * steps + i, 0)),
                pl.BlockSpec((tm, n_fft), lambda c, i: (c * steps + i, 0)),
                # Constant index map -> the pipeline fetches the DFT once.
                pl.BlockSpec((n_fft, 2 * nbh), lambda c, i: (0, 0)),
            ],
            out_specs=(pl.BlockSpec((None, tm, nbh), lambda c, i: (c, 0, 0)),
                       pl.BlockSpec((None, tm, nbh), lambda c, i: (c, 0, 0))),
        ),
        compiler_params=pltpu.CompilerParams(
            dimension_semantics=("parallel", "arbitrary"),
            vmem_limit_bytes=48 * 1024 * 1024),
    )(xf, yf, dft)


# ------------------------- trace-time constants (numpy) -------------------------

def _hann_window_np(win_length):
    # torch.hann_window default (periodic=True)
    n = np.arange(win_length, dtype=np.float64)
    return 0.5 - 0.5 * np.cos(2.0 * np.pi * n / win_length)


def _padded_window_np(n_fft, win_length):
    win = _hann_window_np(win_length)
    left = (n_fft - win_length) // 2
    win_p = np.zeros(n_fft, dtype=np.float64)
    win_p[left:left + win_length] = win
    return win_p


def _windowed_dft_np(n_fft, win_length, nbh):
    """[win*cos_k | -win*sin_k] for k = 0 .. n_fft//2 - 1 (Nyquist excluded),
    each half zero-padded to nbh lanes, built with numpy so it is baked as a
    bf16 compile-time constant."""
    nb_k = n_fft // 2
    n = np.arange(n_fft, dtype=np.float64)[:, None]
    k = np.arange(nb_k, dtype=np.float64)[None, :]
    ang = 2.0 * np.pi * n * k / n_fft
    win_p = _padded_window_np(n_fft, win_length)
    pad = nbh - nb_k
    cos_h = np.pad(win_p[:, None] * np.cos(ang), ((0, 0), (0, pad)))
    sin_h = np.pad(win_p[:, None] * -np.sin(ang), ((0, 0), (0, pad)))
    dft = np.concatenate([cos_h, sin_h], axis=1).astype(np.float32)
    return dft.astype(jnp.bfloat16)            # numpy array with bf16 dtype


def _nyquist_kernel_np(n_fft, win_length):
    # Nyquist bin (k = n_fft/2) is purely real: sum_t f[t] * w[t] * (-1)^t.
    win_p = _padded_window_np(n_fft, win_length)
    sign = np.where(np.arange(n_fft) % 2 == 0, 1.0, -1.0)
    return (win_p * sign).astype(np.float32)


def _num_tensorcores():
    # v7x exposes 2 TensorCores per chip to one Pallas program; v5e/v6e have 1.
    try:
        kind = jax.devices()[0].device_kind.lower()
    except Exception:
        return 1
    return 2 if "v7" in kind else 1


# ------------------------------- glue (JAX) -------------------------------

def spectral_convergence_loss(x, y, fft_size=1024, shift_size=120,
                              win_length=600, tm=512, n_splits=None):
    """x, y: (B, 1, T). Returns scalar spectral-convergence (L1/L1) loss."""
    xs = x[:, 0, :].astype(jnp.float32)
    ys = y[:, 0, :].astype(jnp.float32)
    B, T = xs.shape

    if n_splits is None:
        n_splits = _num_tensorcores()

    # torch.stft(center=True, pad_mode='reflect')
    pad = fft_size // 2
    xp = jnp.pad(xs, ((0, 0), (pad, pad)), mode='reflect')   # (B, T + n_fft) f32
    yp = jnp.pad(ys, ((0, 0), (pad, pad)), mode='reflect')
    t_pad = T + fft_size
    n_frames = 1 + (t_pad - fft_size) // shift_size
    n_rows = B * n_frames

    nb_k = fft_size // 2                       # bins computed on the MXU
    nbh = _round_up(max(nb_k, 1), 128)         # lane-padded half width

    # --- tile / grid selection: big MXU tiles, >=2 steps/split when possible
    # so the frame DMA overlaps compute, row counts multiples of 16 (bf16).
    rows_per_split = _cdiv(n_rows, n_splits)
    tm_eff = min(_round_up(tm, 16),
                 max(16, _round_up(_cdiv(rows_per_split, 2), 16)))
    steps = _cdiv(rows_per_split, tm_eff)
    r_pad = n_splits * steps * tm_eff
    n_pad_rows = r_pad - n_rows

    # --- frames: one strided-window gather straight to the padded row count.
    # Pad rows read an appended zero tail -> exact zero frames, no extra
    # frames-sized pad/concat copies in HBM.
    def frame(sig_padded):
        sig_b = jnp.pad(sig_padded.astype(jnp.bfloat16),
                        ((0, 0), (0, fft_size)))             # per-row zero tail
        tp_tot = t_pad + fft_size
        flat = sig_b.reshape(-1)
        starts = (np.arange(B, dtype=np.int32)[:, None] * tp_tot
                  + np.arange(n_frames, dtype=np.int32)[None, :] * shift_size
                  ).reshape(-1)
        starts = np.concatenate(
            [starts, np.full((n_pad_rows,), t_pad, dtype=np.int32)])
        starts = jnp.asarray(starts)
        return jax.vmap(
            lambda s: jax.lax.dynamic_slice(flat, (s,), (fft_size,)))(starts)

    xf = frame(xp)                              # (r_pad, n_fft) bf16
    yf = frame(yp)

    dft = _windowed_dft_np(fft_size, win_length, nbh)

    num_p, den_p = _sc_pallas(xf, yf, dft, tm_eff, steps, n_splits, nbh)

    # --- Nyquist bin: tiny hop-strided f32 conv on the reflect-padded signal
    # (reads ~1x signal instead of re-reading the frames array).
    nyq_k = _nyquist_kernel_np(fft_size, win_length)
    def nyquist(sig_padded):
        out = jax.lax.conv_general_dilated(
            sig_padded[:, None, :], jnp.asarray(nyq_k)[None, None, :],
            window_strides=(shift_size,), padding='VALID',
            dimension_numbers=('NCH', 'OIH', 'NCH'))
        return out[:, 0, :]                     # (B, n_frames)

    x_nyq = jnp.sqrt(jnp.maximum(jnp.abs(nyquist(xp)), 1e-7))
    y_nyq = jnp.sqrt(jnp.maximum(jnp.abs(nyquist(yp)), 1e-7))

    # Zero-padded rows / lane-pad columns contribute exactly sqrt(1e-7) to the
    # denominator and 0 to the numerator (x and y padding identical); subtract
    # the statically-known denominator excess.
    sqrt_eps = jnp.sqrt(jnp.asarray(1e-7, dtype=jnp.float32))
    excess = float(n_rows * (nbh - nb_k) + n_pad_rows * nbh)

    num = jnp.sum(num_p) + jnp.sum(jnp.abs(y_nyq - x_nyq))
    den = jnp.sum(den_p) - sqrt_eps * excess + jnp.sum(y_nyq)
    return num / den


# ------------------------- pure-JAX reference check -------------------------

def _ref_loss(x, y, fft_size, shift_size, win_length):
    xs = x[:, 0, :].astype(jnp.float32)
    ys = y[:, 0, :].astype(jnp.float32)

    win_p = jnp.asarray(_padded_window_np(fft_size, win_length), jnp.float32)

    n_bins = fft_size // 2 + 1
    n = jnp.arange(fft_size, dtype=jnp.float32)[:, None]
    k = jnp.arange(n_bins, dtype=jnp.float32)[None, :]
    ang = 2.0 * jnp.pi * n * k / fft_size
    cos_m, sin_m = jnp.cos(ang), -jnp.sin(ang)

    def frames(sig):
        pad = fft_size // 2
        sp = jnp.pad(sig, ((0, 0), (pad, pad)), mode='reflect')
        t_pad = sp.shape[1]
        nf = 1 + (t_pad - fft_size) // shift_size
        idx = (jnp.arange(nf) * shift_size)[:, None] + jnp.arange(fft_size)[None, :]
        return sp[:, idx].reshape(-1, fft_size)

    def mag(sig):
        f = frames(sig) * win_p[None, :]
        re = f @ cos_m
        im = f @ sin_m
        return jnp.sqrt(jnp.maximum(jnp.sqrt(re * re + im * im), 1e-7))

    xm, ym = mag(xs), mag(ys)
    return jnp.sum(jnp.abs(ym - xm)) / jnp.sum(jnp.abs(ym))


if __name__ == "__main__":
    key = jax.random.PRNGKey(0)
    B, T = 2, 512
    k1, k2 = jax.random.split(key)
    x = jax.random.normal(k1, (B, 1, T), dtype=jnp.float32)
    y = jax.random.normal(k2, (B, 1, T), dtype=jnp.float32)

    fft_size, shift_size, win_length = 128, 32, 64   # small demo STFT config
    loss_fn = jax.jit(lambda a, b: spectral_convergence_loss(
        a, b, fft_size=fft_size, shift_size=shift_size, win_length=win_length))
    loss = loss_fn(x, y)
    jax.block_until_ready(loss)

    ref = _ref_loss(x, y, fft_size, shift_size, win_length)
    # bf16 matmul inputs (f32 accumulate) vs f32 reference -> loose-ish rtol.
    assert np.allclose(np.asarray(loss), np.asarray(ref), rtol=1e-2, atol=1e-4), (
        float(loss), float(ref))
    print("KERNEL_OK")
</pallas_src>

<mosaic_0001>
module attributes {stable_mosaic.version = 11 : i64} {
  func.func @_sc_kernel(%arg0: i32, %arg1: i32, %arg2: memref<32x128xbf16, #tpu.memory_space<vmem>>, %arg3: memref<32x128xbf16, #tpu.memory_space<vmem>>, %arg4: memref<128x256xbf16, #tpu.memory_space<vmem>>, %arg5: memref<1x32x128xf32, #tpu.memory_space<vmem>>, %arg6: memref<1x32x128xf32, #tpu.memory_space<vmem>>) attributes {dimension_semantics = [#tpu.dimension_semantics<parallel>, #tpu.dimension_semantics<arbitrary>], iteration_bounds = array<i64: 1, 2>, scalar_prefetch = 0 : i64, scratch_operands = 0 : i64, tpu.core_type = #tpu.core_type<tc>, window_params = [{transform_indices = @transform_0, window_bounds = array<i64: 32, 128>}, {transform_indices = @transform_1, window_bounds = array<i64: 32, 128>}, {pipeline_mode = #tpu.pipeline_mode<synchronous>, transform_indices = @transform_2, window_bounds = array<i64: 128, 256>}, {transform_indices = @transform_3, window_bounds = array<i64: 1, 32, 128>}, {transform_indices = @transform_4, window_bounds = array<i64: 1, 32, 128>}]} {
    %c0_i32 = arith.constant 0 : i32
    %0 = arith.cmpi eq, %arg1, %c0_i32 : i32
    %1 = arith.extui %0 : i1 to i32
    %c0_i32_0 = arith.constant 0 : i32
    %2 = arith.cmpi ne, %1, %c0_i32_0 : i32
    scf.if %2 {
      %cst_21 = arith.constant 0.000000e+00 : f32
      %40 = vector.broadcast %cst_21 : f32 to vector<32x128xf32>
      %c0_22 = arith.constant 0 : index
      %c0_23 = arith.constant 0 : index
      %c0_24 = arith.constant 0 : index
      %41 = vector.load %arg5[%c0_22, %c0_23, %c0_24] : memref<1x32x128xf32, #tpu.memory_space<vmem>>, vector<1x32x128xf32>
      %42 = vector.shape_cast %41 : vector<1x32x128xf32> to vector<32x128xf32>
      %43 = vector.shape_cast %40 : vector<32x128xf32> to vector<1x32x128xf32>
      tpu.vector_store %arg5[%c0_22, %c0_23, %c0_24], %43 {strides = array<i32>} : memref<1x32x128xf32, #tpu.memory_space<vmem>>, vector<1x32x128xf32>,
      %cst_25 = arith.constant 0.000000e+00 : f32
      %44 = vector.broadcast %cst_25 : f32 to vector<32x128xf32>
      %c0_26 = arith.constant 0 : index
      %c0_27 = arith.constant 0 : index
      %c0_28 = arith.constant 0 : index
      %45 = vector.load %arg6[%c0_26, %c0_27, %c0_28] : memref<1x32x128xf32, #tpu.memory_space<vmem>>, vector<1x32x128xf32>
      %46 = vector.shape_cast %45 : vector<1x32x128xf32> to vector<32x128xf32>
      %47 = vector.shape_cast %44 : vector<32x128xf32> to vector<1x32x128xf32>
      tpu.vector_store %arg6[%c0_26, %c0_27, %c0_28], %47 {strides = array<i32>} : memref<1x32x128xf32, #tpu.memory_space<vmem>>, vector<1x32x128xf32>,
    } else {
    }
    %c0 = arith.constant 0 : index
    %c0_1 = arith.constant 0 : index
    %3 = vector.load %arg4[%c0, %c0_1] : memref<128x256xbf16, #tpu.memory_space<vmem>>, vector<128x256xbf16>
    %c0_2 = arith.constant 0 : index
    %c0_3 = arith.constant 0 : index
    %4 = vector.load %arg2[%c0_2, %c0_3] : memref<32x128xbf16, #tpu.memory_space<vmem>>, vector<32x128xbf16>
    %cst = arith.constant dense<0.000000e+00> : vector<32x256xf32>
    %5 = tpu.matmul %4, %3, %cst {dimension_numbers = #tpu.dot_dimension_numbers<[1], [0], [0], [1], [0, 0, 1, 1], [], []>} : vector<32x128xbf16>, vector<128x256xbf16>, vector<32x256xf32> -> vector<32x256xf32>
    %c0_4 = arith.constant 0 : index
    %c0_5 = arith.constant 0 : index
    %6 = vector.load %arg3[%c0_4, %c0_5] : memref<32x128xbf16, #tpu.memory_space<vmem>>, vector<32x128xbf16>
    %cst_6 = arith.constant dense<0.000000e+00> : vector<32x256xf32>
    %7 = tpu.matmul %6, %3, %cst_6 {dimension_numbers = #tpu.dot_dimension_numbers<[1], [0], [0], [1], [0, 0, 1, 1], [], []>} : vector<32x128xbf16>, vector<128x256xbf16>, vector<32x256xf32> -> vector<32x256xf32>
    %8 = vector.extract_strided_slice %5 {offsets = [0, 0], sizes = [32, 128], strides = [1, 1]} : vector<32x256xf32> to vector<32x128xf32>
    %9 = vector.extract_strided_slice %5 {offsets = [0, 128], sizes = [32, 128], strides = [1, 1]} : vector<32x256xf32> to vector<32x128xf32>
    %10 = arith.mulf %8, %8 : vector<32x128xf32>
    %11 = arith.mulf %9, %9 : vector<32x128xf32>
    %12 = arith.addf %10, %11 : vector<32x128xf32>
    %cst_7 = arith.constant 9.99999982E-15 : f32
    %13 = vector.broadcast %cst_7 : f32 to vector<32x128xf32>
    %14 = arith.maximumf %12, %13 : vector<32x128xf32>
    %15 = math.rsqrt %14 : vector<32x128xf32>
    %16 = math.rsqrt %15 : vector<32x128xf32>
    %17 = vector.extract_strided_slice %7 {offsets = [0, 0], sizes = [32, 128], strides = [1, 1]} : vector<32x256xf32> to vector<32x128xf32>
    %18 = vector.extract_strided_slice %7 {offsets = [0, 128], sizes = [32, 128], strides = [1, 1]} : vector<32x256xf32> to vector<32x128xf32>
    %19 = arith.mulf %17, %17 : vector<32x128xf32>
    %20 = arith.mulf %18, %18 : vector<32x128xf32>
    %21 = arith.addf %19, %20 : vector<32x128xf32>
    %cst_8 = arith.constant 9.99999982E-15 : f32
    %22 = vector.broadcast %cst_8 : f32 to vector<32x128xf32>
    %23 = arith.maximumf %21, %22 : vector<32x128xf32>
    %24 = math.rsqrt %23 : vector<32x128xf32>
    %25 = math.rsqrt %24 : vector<32x128xf32>
    %c0_9 = arith.constant 0 : index
    %c0_10 = arith.constant 0 : index
    %c0_11 = arith.constant 0 : index
    %26 = vector.load %arg5[%c0_9, %c0_10, %c0_11] : memref<1x32x128xf32, #tpu.memory_space<vmem>>, vector<1x32x128xf32>
    %27 = vector.shape_cast %26 : vector<1x32x128xf32> to vector<32x128xf32>
    %28 = arith.subf %25, %16 : vector<32x128xf32>
    %29 = math.absf %28 : vector<32x128xf32>
    %30 = arith.addf %27, %29 : vector<32x128xf32>
    %c0_12 = arith.constant 0 : index
    %c0_13 = arith.constant 0 : index
    %c0_14 = arith.constant 0 : index
    %31 = vector.load %arg5[%c0_12, %c0_13, %c0_14] : memref<1x32x128xf32, #tpu.memory_space<vmem>>, vector<1x32x128xf32>
    %32 = vector.shape_cast %31 : vector<1x32x128xf32> to vector<32x128xf32>
    %33 = vector.shape_cast %30 : vector<32x128xf32> to vector<1x32x128xf32>
    tpu.vector_store %arg5[%c0_12, %c0_13, %c0_14], %33 {strides = array<i32>} : memref<1x32x128xf32, #tpu.memory_space<vmem>>, vector<1x32x128xf32>,
    %c0_15 = arith.constant 0 : index
    %c0_16 = arith.constant 0 : index
    %c0_17 = arith.constant 0 : index
    %34 = vector.load %arg6[%c0_15, %c0_16, %c0_17] : memref<1x32x128xf32, #tpu.memory_space<vmem>>, vector<1x32x128xf32>
    %35 = vector.shape_cast %34 : vector<1x32x128xf32> to vector<32x128xf32>
    %36 = arith.addf %35, %25 : vector<32x128xf32>
    %c0_18 = arith.constant 0 : index
    %c0_19 = arith.constant 0 : index
    %c0_20 = arith.constant 0 : index
    %37 = vector.load %arg6[%c0_18, %c0_19, %c0_20] : memref<1x32x128xf32, #tpu.memory_space<vmem>>, vector<1x32x128xf32>
    %38 = vector.shape_cast %37 : vector<1x32x128xf32> to vector<32x128xf32>
    %39 = vector.shape_cast %36 : vector<32x128xf32> to vector<1x32x128xf32>
    tpu.vector_store %arg6[%c0_18, %c0_19, %c0_20], %39 {strides = array<i32>} : memref<1x32x128xf32, #tpu.memory_space<vmem>>, vector<1x32x128xf32>,
    return
  }
  func.func @transform_0(%arg0: i32, %arg1: i32) -> (i32, i32) {
    %c2_i32 = arith.constant 2 : i32
    %0 = arith.muli %arg0, %c2_i32 : i32
    %1 = arith.addi %0, %arg1 : i32
    %c0_i32 = arith.constant 0 : i32
    %c0_i32_0 = arith.constant 0 : i32
    return %1, %c0_i32 : i32, i32
  }
  func.func @transform_1(%arg0: i32, %arg1: i32) -> (i32, i32) {
    %c2_i32 = arith.constant 2 : i32
    %0 = arith.muli %arg0, %c2_i32 : i32
    %1 = arith.addi %0, %arg1 : i32
    %c0_i32 = arith.constant 0 : i32
    %c0_i32_0 = arith.constant 0 : i32
    return %1, %c0_i32 : i32, i32
  }
  func.func @transform_2(%arg0: i32, %arg1: i32) -> (i32, i32) {
    %c0_i32 = arith.constant 0 : i32
    %c0_i32_0 = arith.constant 0 : i32
    %c0_i32_1 = arith.constant 0 : i32
    return %c0_i32, %c0_i32_0 : i32, i32
  }
  func.func @transform_3(%arg0: i32, %arg1: i32) -> (i32, i32, i32) {
    %c0_i32 = arith.constant 0 : i32
    %c0_i32_0 = arith.constant 0 : i32
    %c0_i32_1 = arith.constant 0 : i32
    return %arg0, %c0_i32, %c0_i32_0 : i32, i32, i32
  }
  func.func @transform_4(%arg0: i32, %arg1: i32) -> (i32, i32, i32) {
    %c0_i32 = arith.constant 0 : i32
    %c0_i32_0 = arith.constant 0 : i32
    %c0_i32_1 = arith.constant 0 : i32
    return %arg0, %c0_i32, %c0_i32_0 : i32, i32, i32
  }
}

</mosaic_0001>

<bundles_post_ra>
// kernel: _lambda_.1
= control target key start
LH: loop header
LB: loop body
LE: loop exit
PB: predicated region body
PF: predicated region fallthrough
CT: control target
= control target key end

     0   :  { %s875_s15 = smov 0   ;;  %s877_s16 = smov 0   ;;  %s1036_s0 = inlined_call_operand.vmem [shape: bf16[64,128], index: 0, kind: input, shape index: {}]   ;;  %s1037_s1 = inlined_call_operand.vmem [shape: bf16[64,128], index: 1, kind: input, shape index: {}]   ;;  %s1038_s2 = inlined_call_operand.vmem [shape: bf16[128,256], index: 2, kind: input, shape index: {}]   ;;  %s1039_s3 = inlined_call_operand.vmem [shape: f32[1,32,128], index: 3, kind: output, shape index: {0}]   ;;  %s1040_s4 = inlined_call_operand.vmem [shape: f32[1,32,128], index: 4, kind: output, shape index: {1}]  }
   0x1   :  { %s879_s17 = smov 0  }
   0x2 LB: > { %s24_s18 = sadd.s32 1, %s842_s16  ;;  %p708_p0 = scmp.ge.s32.totalorder %s846_s17, 1  ;;  %s846_s17 = sphi %s879_s17, %s15_s17   ;;  %s842_s16 = sphi %s877_s16, %s1042_s16   ;;  %s838_s15 = sphi %s875_s15, %s1041_s15  }
   0x3   : > { %p25_p1 = scmp.ge.s32.totalorder %s24_s18, 2  ;;  %p205_p2 = scmp.lt.s32.totalorder %s846_s17, 3 }
   0x5   : > { %s1044_s18 = smov (%p25_p1, %s24_s18), 0  ;;  %p206_p3 = pnand %p708_p0, %p205_p2 }
   0x6   : > { %s709_s19 = sshll.u32 (!%p206_p3), %s838_s15, 2  ;;  %p713_p5 = scmp.ne.s32.totalorder (!%p206_p3), %s838_s15, 0 }
   0x7   : > { %209 = sbr.rel (%p206_p3) target bundleno = 318 (0x13e), region = 32  ;;  %p248_p4 = scmp.lt.s32.totalorder (!%p206_p3), %s709_s19, 7 }
   0xe   : > { %s1046_s19 = smov (!%p248_p4, %s709_s19), 7  ;;  %279 = sbr.rel (%p713_p5) target bundleno = 21 (0x15), region = 36 }
   0xf   : > { %s710_s20 = sshll.u32 %s1046_s19, 2  ;;  %v848_v0 = vmov (!%p713_p5), 0.0  }
  0x10   : > { %s896_s23 = scalar_lea.vmem %s1036_s0, %s710_s20  ;;  %s901_s26 = scalar_lea.vmem %s1037_s1, %s710_s20  ;;  %280 = vst [vmem:[%s1039_s3] sm:$0xff] (!%p713_p5), %v848_v0  ;;  %281 = vst [vmem:[%s1039_s3 + $0x8] sm:$0xff] (!%p713_p5), %v848_v0 }
  0x11   : > { %282 = vst [vmem:[%s1039_s3 + $0x10] sm:$0xff] (!%p713_p5), %v848_v0  ;;  %283 = vst [vmem:[%s1039_s3 + $0x18] sm:$0xff] (!%p713_p5), %v848_v0 }
  0x12   : > { %284 = vst [vmem:[%s1040_s4] sm:$0xff] (!%p713_p5), %v848_v0  ;;  %285 = vst [vmem:[%s1040_s4 + $0x8] sm:$0xff] (!%p713_p5), %v848_v0 }
  0x13   : > { %286 = vst [vmem:[%s1040_s4 + $0x10] sm:$0xff] (!%p713_p5), %v848_v0  ;;  %287 = vst [vmem:[%s1040_s4 + $0x18] sm:$0xff] (!%p713_p5), %v848_v0 }
  0x15 PF: > { %v764_v1 = vld [vmem:[%s1038_s2 + $0x4] ss:$8 sps:$4 sm:$0xff]   ;;  %v766_v2 = vld [vmem:[%s1038_s2] ss:$8 sps:$4 sm:$0xff]   ;;  %v849_v3 = vmov 0  }
  0x16   : > { %432 = vmatprep.mubr.bf16.mxu0 %v849_v3  ;;  %501 = vmatprep.mubr.bf16.mxu1 %v849_v3  ;;  %v767_v4 = vld [vmem:[%s1038_s2 + $0x14] ss:$8 sps:$4 sm:$0xff]   ;;  %v769_v5 = vld [vmem:[%s1038_s2 + $0x10] ss:$8 sps:$4 sm:$0xff]   ;;  %v770_v6 = vld [vmem:[%s1038_s2 + $0x24] ss:$8 sps:$4 sm:$0xff]  }
  0x17   : > { %400 = vmatprep.subr.bf16.mxu0 %v764_v1  ;;  %469 = vmatprep.subr.bf16.mxu1 %v764_v1  ;;  %v772_v7 = vld [vmem:[%s1038_s2 + $0x20] ss:$8 sps:$4 sm:$0xff]   ;;  %v773_v8 = vld [vmem:[%s1038_s2 + $0x34] ss:$8 sps:$4 sm:$0xff]   ;;  %v775_v9 = vld [vmem:[%s1038_s2 + $0x30] ss:$8 sps:$4 sm:$0xff]  }
  0x18   : > { %401 = vmatpush1.bf16.msra.mxu0 %v766_v2  ;;  %470 = vmatpush1.bf16.msra.mxu1 %v766_v2  ;;  %v776_v10 = vld [vmem:[%s1038_s2 + $0x44] ss:$8 sps:$4 sm:$0xff]   ;;  %v778_v11 = vld [vmem:[%s1038_s2 + $0x40] ss:$8 sps:$4 sm:$0xff]   ;;  %v779_v12 = vld [vmem:[%s1038_s2 + $0x54] ss:$8 sps:$4 sm:$0xff]  }
  0x19   : > { %402 = vmatprep.subr.bf16.mxu0 %v767_v4  ;;  %471 = vmatprep.subr.bf16.mxu1 %v767_v4  ;;  %v781_v13 = vld [vmem:[%s1038_s2 + $0x50] ss:$8 sps:$4 sm:$0xff]   ;;  %v782_v14 = vld [vmem:[%s1038_s2 + $0x64] ss:$8 sps:$4 sm:$0xff]   ;;  %v784_v15 = vld [vmem:[%s1038_s2 + $0x60] ss:$8 sps:$4 sm:$0xff]  }
  0x1a   : > { %v785_v16 = vld [vmem:[%s1038_s2 + $0x74] ss:$8 sps:$4 sm:$0xff]   ;;  %v787_v17 = vld [vmem:[%s1038_s2 + $0x70] ss:$8 sps:$4 sm:$0xff]   ;;  %v788_v18 = vld [vmem:[%s896_s23] sm:$0xff]  }
  0x1b   : > { %v789_v19 = vld [vmem:[%s901_s26] sm:$0xff]   ;;  %v790_v20 = vld [vmem:[%s896_s23 + $0x8] sm:$0xff]  }
  0x1c   : > { %403 = vmatpush1.bf16.msra.mxu0 %v769_v5  ;;  %472 = vmatpush1.bf16.msra.mxu1 %v769_v5  ;;  %v791_v21 = vld [vmem:[%s901_s26 + $0x8] sm:$0xff]  }
  0x1d   : > { %404 = vmatprep.subr.bf16.mxu0 %v770_v6  ;;  %473 = vmatprep.subr.bf16.mxu1 %v770_v6 }
  0x20   : > { %405 = vmatpush1.bf16.msra.mxu0 %v772_v7  ;;  %474 = vmatpush1.bf16.msra.mxu1 %v772_v7 }
  0x21   : > { %406 = vmatprep.subr.bf16.mxu0 %v773_v8  ;;  %475 = vmatprep.subr.bf16.mxu1 %v773_v8 }
  0x24   : > { %407 = vmatpush1.bf16.msra.mxu0 %v775_v9  ;;  %476 = vmatpush1.bf16.msra.mxu1 %v775_v9 }
  0x25   : > { %408 = vmatprep.subr.bf16.mxu0 %v776_v10  ;;  %477 = vmatprep.subr.bf16.mxu1 %v776_v10 }
  0x28   : > { %409 = vmatpush1.bf16.msra.mxu0 %v778_v11  ;;  %478 = vmatpush1.bf16.msra.mxu1 %v778_v11 }
  0x29   : > { %410 = vmatprep.subr.bf16.mxu0 %v779_v12  ;;  %479 = vmatprep.subr.bf16.mxu1 %v779_v12 }
  0x2c   : > { %411 = vmatpush1.bf16.msra.mxu0 %v781_v13  ;;  %480 = vmatpush1.bf16.msra.mxu1 %v781_v13  ;;  %v590_v13 = vld [vmem:[%s1040_s4] sm:$0xff] }
  0x2d   : > { %412 = vmatprep.subr.bf16.mxu0 %v782_v14  ;;  %481 = vmatprep.subr.bf16.mxu1 %v782_v14 }
  0x30   : > { %413 = vmatpush1.bf16.msra.mxu0 %v784_v15  ;;  %482 = vmatpush1.bf16.msra.mxu1 %v784_v15 }
  0x31   : > { %414 = vmatprep.subr.bf16.mxu0 %v785_v16  ;;  %483 = vmatprep.subr.bf16.mxu1 %v785_v16  ;;  %v591_v16 = vld [vmem:[%s1040_s4 + $0x8] sm:$0xff] }
  0x34   : > { %415 = vmatpush1.bf16.msra.mxu0 %v787_v17  ;;  %484 = vmatpush1.bf16.msra.mxu1 %v787_v17 }
  0x37   : > { %433 = vmatmul.mubr.bf16.vlgmr.msra.gmra.mrb[0].mxu0 %v788_v18  ;;  %502 = vmatmul.mubr.bf16.vlgmr.msra.gmra.mrb[0].mxu1 %v789_v19 }
  0x38   : > { %442 = vmatprep.mubr.bf16.mxu0 %v849_v3  ;;  %511 = vmatprep.mubr.bf16.mxu1 %v849_v3 }
  0x3f   : > { %443 = vmatmul.mubr.bf16.gmra.mrb[4].mxu0 %v790_v20  ;;  %512 = vmatmul.mubr.bf16.gmra.mrb[4].mxu1 %v791_v21  ;;  %v570_v21 = vld [vmem:[%s1039_s3] sm:$0xff] }
 0x10a   : > { %v434_v22 = vpop.f32.mrb[0].mxu0  ;;  %v503_v23 = vpop.f32.mrb[0].mxu1 }
 0x10b   : > { %v522_v24 = vmul.f32 %v434_v22, %v434_v22  ;;  %v546_v25 = vmul.f32 %v503_v23, %v503_v23  ;;  %v436_v26 = vpop.f32.mrb[1].mxu0  ;;  %v505_v27 = vpop.f32.mrb[1].mxu1 }
 0x10c   : > { %v526_v28 = vmul.f32 %v436_v26, %v436_v26  ;;  %v550_v29 = vmul.f32 %v505_v27, %v505_v27  ;;  %v438_v30 = vpop.f32.mrb[2].mxu0  ;;  %v507_v31 = vpop.f32.mrb[2].mxu1  ;;  %v571_v26 = vld [vmem:[%s1039_s3 + $0x8] sm:$0xff] }
 0x10d   : > { %v523_v32 = vmul.f32 %v438_v30, %v438_v30  ;;  %v547_v33 = vmul.f32 %v507_v31, %v507_v31  ;;  %v440_v34 = vpop.f32.mrb[3].mxu0  ;;  %v509_v35 = vpop.f32.mrb[3].mxu1 }
 0x10e   : > { %v530_v36 = vadd.f32 %v526_v28, %v522_v24  ;;  %v554_v37 = vadd.f32 %v550_v29, %v546_v25  ;;  %v527_v38 = vmul.f32 %v440_v34, %v440_v34  ;;  %v551_v39 = vmul.f32 %v509_v35, %v509_v35  ;;  %v592_v29 = vld [vmem:[%s1040_s4 + $0x10] sm:$0xff] }
 0x10f   : > { %v572_v35 = vld [vmem:[%s1039_s3 + $0x10] sm:$0xff] }
 0x110   : > { %v534_v40 = vmax.f32 %v530_v36, 1e-14  ;;  %v558_v41 = vmax.f32 %v554_v37, 1e-14  ;;  %v531_v42 = vadd.f32 %v527_v38, %v523_v32  ;;  %v555_v43 = vadd.f32 %v551_v39, %v547_v33  ;;  %v593_v38 = vld [vmem:[%s1040_s4 + $0x18] sm:$0xff] }
 0x112   : > { %792 = vrsqrt.f32 %v534_v40  ;;  %v535_v44 = vmax.f32 %v531_v42, 1e-14  ;;  %v559_v45 = vmax.f32 %v555_v43, 1e-14  ;;  %v444_v46 = vpop.f32.mrb[4].mxu0  ;;  %v513_v47 = vpop.f32.mrb[4].mxu1 }
 0x113   : > { %794 = vrsqrt.f32 %v558_v41  ;;  %v524_v48 = vmul.f32 %v444_v46, %v444_v46  ;;  %v548_v49 = vmul.f32 %v513_v47, %v513_v47  ;;  %v446_v50 = vpop.f32.mrb[5].mxu0  ;;  %v515_v51 = vpop.f32.mrb[5].mxu1  ;;  %v573_v43 = vld [vmem:[%s1039_s3 + $0x18] sm:$0xff] }
 0x114   : > { %796 = vrsqrt.f32 %v535_v44  ;;  %v528_v52 = vmul.f32 %v446_v50, %v446_v50  ;;  %v552_v53 = vmul.f32 %v515_v51, %v515_v51  ;;  %v448_v54 = vpop.f32.mrb[6].mxu0  ;;  %v517_v55 = vpop.f32.mrb[6].mxu1 }
 0x115   : > { %798 = vrsqrt.f32 %v559_v45  ;;  %v525_v56 = vmul.f32 %v448_v54, %v448_v54  ;;  %v549_v57 = vmul.f32 %v517_v55, %v517_v55  ;;  %v450_v58 = vpop.f32.mrb[7].mxu0  ;;  %v519_v59 = vpop.f32.mrb[7].mxu1 }
 0x116   : > { %v532_v60 = vadd.f32 %v528_v52, %v524_v48  ;;  %v556_v61 = vadd.f32 %v552_v53, %v548_v49  ;;  %v529_v62 = vmul.f32 %v450_v58, %v450_v58  ;;  %v553_v63 = vmul.f32 %v519_v59, %v519_v59 }
 0x118   : > { %v536_v0 = vmax.f32 %v532_v60, 1e-14  ;;  %v560_v1 = vmax.f32 %v556_v61, 1e-14  ;;  %v533_v2 = vadd.f32 %v529_v62, %v525_v56  ;;  %v557_v3 = vadd.f32 %v553_v63, %v549_v57 }
 0x11a   : > { %800 = vrsqrt.f32 %v536_v0  ;;  %v537_v4 = vmax.f32 %v533_v2, 1e-14  ;;  %v561_v7 = vmax.f32 %v557_v3, 1e-14 }
 0x11b   : > { %802 = vrsqrt.f32 %v560_v1 }
 0x11c   : > { %v793_v5 = vpop.eup %792  ;;  %804 = vrsqrt.f32 %v537_v4 }
 0x11d   : > { %v795_v6 = vpop.eup %794  ;;  %806 = vrsqrt.f32 %v793_v5 }
 0x11e   : > { %v797_v8 = vpop.eup %796  ;;  %808 = vrsqrt.f32 %v795_v6 }
 0x11f   : > { %v799_v9 = vpop.eup %798  ;;  %810 = vrsqrt.f32 %v797_v8 }
 0x120   : > { %812 = vrsqrt.f32 %v799_v9 }
 0x121   : > { %814 = vrsqrt.f32 %v561_v7 }
 0x124   : > { %v801_v10 = vpop.eup %800 }
 0x125   : > { %v803_v11 = vpop.eup %802  ;;  %816 = vrsqrt.f32 %v801_v10 }
 0x126   : > { %v805_v12 = vpop.eup %804  ;;  %818 = vrsqrt.f32 %v803_v11 }
 0x127   : > { %v807_v14 = vpop.eup %806  ;;  %820 = vrsqrt.f32 %v805_v12 }
 0x128   : > { %v809_v15 = vpop.eup %808 }
 0x129   : > { %v811_v17 = vpop.eup %810  ;;  %v574_v18 = vsub.f32 %v809_v15, %v807_v14  ;;  %v594_v19 = vadd.f32 %v809_v15, %v590_v13 }
 0x12a   : > { %v813_v20 = vpop.eup %812 }
 0x12b   : > { %v815_v22 = vpop.eup %814  ;;  %v578_v23 = vand.u32 2147483647, %v574_v18  ;;  %598 = vst [vmem:[%s1040_s4] sm:$0xff] %v594_v19  ;;  %v575_v24 = vsub.f32 %v813_v20, %v811_v17  ;;  %v595_v25 = vadd.f32 %v813_v20, %v591_v16 }
 0x12c   : > { %822 = vrsqrt.f32 %v815_v22 }
 0x12d   : > { %v582_v27 = vadd.f32 %v578_v23, %v570_v21  ;;  %v579_v28 = vand.u32 2147483647, %v575_v24  ;;  %599 = vst [vmem:[%s1040_s4 + $0x8] sm:$0xff] %v595_v25 }
 0x12f   : > { %v817_v30 = vpop.eup %816  ;;  %586 = vst [vmem:[%s1039_s3] sm:$0xff] %v582_v27  ;;  %v583_v31 = vadd.f32 %v579_v28, %v571_v26 }
 0x130   : > { %v819_v32 = vpop.eup %818 }
 0x131   : > { %587 = vst [vmem:[%s1039_s3 + $0x8] sm:$0xff] %v583_v31  ;;  %v576_v33 = vsub.f32 %v819_v32, %v817_v30  ;;  %v596_v34 = vadd.f32 %v819_v32, %v592_v29  ;;  %v821_v37 = vpop.eup %820 }
 0x133   : > { %v580_v36 = vand.u32 2147483647, %v576_v33  ;;  %600 = vst [vmem:[%s1040_s4 + $0x10] sm:$0xff] %v596_v34 }
 0x135   : > { %v584_v39 = vadd.f32 %v580_v36, %v572_v35 }
 0x136   : > { %v823_v40 = vpop.eup %822 }
 0x137   : > { %588 = vst [vmem:[%s1039_s3 + $0x10] sm:$0xff] %v584_v39  ;;  %v577_v41 = vsub.f32 %v823_v40, %v821_v37  ;;  %v597_v42 = vadd.f32 %v823_v40, %v593_v38 }
 0x139   : > { %v581_v44 = vand.u32 2147483647, %v577_v41  ;;  %601 = vst [vmem:[%s1040_s4 + $0x18] sm:$0xff] %v597_v42 }
 0x13b   : > { %v585_v45 = vadd.f32 %v581_v44, %v573_v43 }
 0x13d   : > { %589 = vst [vmem:[%s1039_s3 + $0x18] sm:$0xff] %v585_v45 }
 0x13e PF: > { %s15_s17 = sadd.s32 1, %s846_s17   ;;  %s1041_s15 = smov %s842_s16 }
 0x13f   : > { %p12_p6 = scmp.ge.s32.totalorder %s15_s17, 4   ;;  %s1042_s16 = smov %s1044_s18 }
 0x141   :  { %14 = sbr.rel (!%p12_p6) target bundleno = 2 (0x2), region = 81 }

</bundles_post_ra>
